<compile_context>
chip_gen: v6e
topology: v6e:2x2x1
jax: 0.10.0
libtpu: 0.0.40
codegen_flags: <defaults>
</compile_context>

<pallas_src>
import functools

import jax
import jax.numpy as jnp
import numpy as np
from jax.experimental import pallas as pl
from jax.experimental.pallas import tpu as pltpu  # noqa: F401  (TPU backend)


# ----------------------------------------------------------------------------
# Fused kernel:
#   fc_1 -> BatchNorm1d (training batch stats) -> ReLU
#   -> fc_2 split as (emb-part + hidden-part, avoids an in-kernel concat)
#   -> sigmoid
#   -> masks_flat = results @ block_diag(units / num_units)      (lane-dense)
# ----------------------------------------------------------------------------
def _generator_kernel(label_ref, emb_ref, w1_ref, b1_ref, gamma_ref, beta_ref,
                      w2e_ref, w2h_ref, b2_ref, units_bd_ref, masks_ref,
                      *, compute_dtype):
    # fc_1 : [B, TC] @ [TC, H]   (f32 accumulation on the MXU)
    h = (jnp.dot(label_ref[...], w1_ref[...],
                 preferred_element_type=jnp.float32) + b1_ref[...])

    # BatchNorm1d, training mode: batch mean / biased batch var, eps = 1e-5.
    mean = jnp.mean(h, axis=0, keepdims=True)
    var = jnp.mean(h * h, axis=0, keepdims=True) - mean * mean
    hn = (h - mean) * jax.lax.rsqrt(var + 1e-5) * gamma_ref[...] + beta_ref[...]
    x = jnp.maximum(hn, 0.0).astype(compute_dtype)                # ReLU

    # fc_2 on cat([emb, x], -1)  ==  emb @ W2_emb + x @ W2_hid + b2
    logits = (jnp.dot(emb_ref[...], w2e_ref[...], preferred_element_type=jnp.float32)
              + jnp.dot(x, w2h_ref[...], preferred_element_type=jnp.float32)
              + b2_ref[...])
    results = jax.nn.sigmoid(logits).astype(compute_dtype)        # [B, OF]

    # Per-chunk weighted sum over units, fused as one matmul against the
    # block-diagonal units matrix (1/num_units already folded in).
    masks_ref[...] = jnp.dot(results, units_bd_ref[...],
                             preferred_element_type=jnp.float32)  # [B, C*X*Y]


# ----------------------------------------------------------------------------
# Wrapper mirroring Generator.forward
# ----------------------------------------------------------------------------
def generator_forward(emb, label, units, params, *, num_units, units_x, units_y,
                      seg, compute_dtype=jnp.float32):
    B, emb_dim = emb.shape
    w1, b1, gamma, beta, w2, b2 = (params["w1"], params["b1"], params["gamma"],
                                   params["beta"], params["w2"], params["b2"])
    hidden_dim = w1.shape[1]
    out_features = w2.shape[1]
    total_chunks = int(sum(seg))
    xy = units_x * units_y
    assert total_chunks * num_units == out_features

    # fc_2 weight split: avoids an in-kernel concatenation.
    w2_emb = w2[:emb_dim, :].astype(compute_dtype)                  # [E, OF]
    w2_hid = w2[emb_dim:, :].astype(compute_dtype)                  # [H, OF]

    # Block-diagonal units matrix [OF, chunks*X*Y]; 1/num_units folded in so
    # the kernel never multiplies the full output by a scalar.
    units_flat = units.reshape(num_units, xy).astype(jnp.float32) * (1.0 / num_units)
    units_bd = jnp.kron(jnp.eye(total_chunks, dtype=jnp.float32),
                        units_flat).astype(compute_dtype)           # [OF, C*XY]

    masks_flat = pl.pallas_call(
        functools.partial(_generator_kernel, compute_dtype=compute_dtype),
        out_shape=jax.ShapeDtypeStruct((B, total_chunks * xy), jnp.float32),
    )(label.astype(compute_dtype), emb.astype(compute_dtype),
      w1.astype(compute_dtype),
      b1.reshape(1, hidden_dim), gamma.reshape(1, hidden_dim),
      beta.reshape(1, hidden_dim),
      w2_emb, w2_hid, b2.reshape(1, out_features),
      units_bd)

    # Reshape / split into the per-segment outputs of the PyTorch module:
    # masks[i] : [B, seg[i] * units_x, units_y]
    mask_full = masks_flat.reshape(B, total_chunks, units_x, units_y)
    masks, off = [], np.cumsum([0] + list(seg))
    for i in range(len(seg)):
        chunk = mask_full[:, off[i]:off[i + 1]]                     # [B, seg, X, Y]
        masks.append(chunk.reshape(B, seg[i] * units_x, units_y))
    return masks


# ----------------------------------------------------------------------------
# Deterministic parameter init (PyTorch nn.Linear-style uniform)
# ----------------------------------------------------------------------------
def init_params(key, total_class, hidden_dim, in_features, out_features):
    k1, k2, k3, k4 = jax.random.split(key, 4)
    lim1 = 1.0 / np.sqrt(total_class)
    lim2 = 1.0 / np.sqrt(in_features)
    return {
        # stored pre-transposed: [in, out]
        "w1": jax.random.uniform(k1, (total_class, hidden_dim), jnp.float32, -lim1, lim1),
        "b1": jax.random.uniform(k2, (hidden_dim,), jnp.float32, -lim1, lim1),
        "gamma": jnp.ones((hidden_dim,), jnp.float32),
        "beta": jnp.zeros((hidden_dim,), jnp.float32),
        "w2": jax.random.uniform(k3, (in_features, out_features), jnp.float32, -lim2, lim2),
        "b2": jax.random.uniform(k4, (out_features,), jnp.float32, -lim2, lim2),
    }


# ----------------------------------------------------------------------------
# Pure-JAX reference (independent path, mirrors the PyTorch forward)
# ----------------------------------------------------------------------------
def _reference(emb, label, units, params, *, num_units, units_x, units_y, seg):
    h = label @ params["w1"] + params["b1"]
    mean = jnp.mean(h, axis=0, keepdims=True)
    var = jnp.mean((h - mean) ** 2, axis=0, keepdims=True)
    hn = (h - mean) / jnp.sqrt(var + 1e-5) * params["gamma"] + params["beta"]
    x = jnp.concatenate([emb, jnp.maximum(hn, 0.0)], -1)
    results = jax.nn.sigmoid(x @ params["w2"] + params["b2"])
    B = emb.shape[0]
    w = results.reshape(B, sum(seg), num_units)
    full = jnp.einsum("bnu,uxy->bnxy", w, units) / num_units
    masks, off = [], np.cumsum([0] + list(seg))
    for i in range(len(seg)):
        masks.append(full[:, off[i]:off[i + 1]].reshape(B, seg[i] * units_x, units_y))
    return masks


# TODO(synk): eval-mode BatchNorm (running-stat buffers / their update) is not
# implemented; the forward output matches the PyTorch module in train() mode.

if __name__ == "__main__":
    # small, consistent shapes
    B = 8
    total_class = 16
    hidden_dim = 32
    emb_dim = 32
    in_features = emb_dim + hidden_dim          # fc_2 input = cat([emb, hidden])
    num_units = 8
    units_x, units_y = 8, 16                    # X*Y = 128 -> lane-dense output
    seg = [2, 3]
    out_features = sum(seg) * num_units         # 40

    key = jax.random.PRNGKey(0)
    kp, ke, kl, ku = jax.random.split(key, 4)
    params = init_params(kp, total_class, hidden_dim, in_features, out_features)

    emb = jax.random.normal(ke, (B, emb_dim), jnp.float32)
    label = jax.random.normal(kl, (B, total_class), jnp.float32)
    units = jax.random.normal(ku, (num_units, units_x, units_y), jnp.float32)

    ref = _reference(emb, label, units, params,
                     num_units=num_units, units_x=units_x,
                     units_y=units_y, seg=seg)

    # --- f32 path (strict tolerance) -------------------------------------
    masks = generator_forward(emb, label, units, params,
                              num_units=num_units, units_x=units_x,
                              units_y=units_y, seg=seg,
                              compute_dtype=jnp.float32)
    masks = [jax.block_until_ready(m) for m in masks]
    for m, r, s in zip(masks, ref, seg):
        assert m.shape == (B, s * units_x, units_y), m.shape
        np.testing.assert_allclose(np.asarray(m), np.asarray(r), rtol=1e-5, atol=1e-5)

    # --- bf16 MXU-operand path (v6e/v7x perf path), looser tolerance ------
    masks_bf16 = generator_forward(emb, label, units, params,
                                   num_units=num_units, units_x=units_x,
                                   units_y=units_y, seg=seg,
                                   compute_dtype=jnp.bfloat16)
    masks_bf16 = [jax.block_until_ready(m) for m in masks_bf16]
    for m, r in zip(masks_bf16, ref):
        np.testing.assert_allclose(np.asarray(m), np.asarray(r), rtol=5e-2, atol=5e-2)

    print("KERNEL_OK")
</pallas_src>

<mosaic_0001>
module attributes {stable_mosaic.version = 11 : i64} {
  func.func @_generator_kernel(%arg0: memref<8x16xf32, #tpu.memory_space<vmem>>, %arg1: memref<8x32xf32, #tpu.memory_space<vmem>>, %arg2: memref<16x32xf32, #tpu.memory_space<vmem>>, %arg3: memref<1x32xf32, #tpu.memory_space<vmem>>, %arg4: memref<1x32xf32, #tpu.memory_space<vmem>>, %arg5: memref<1x32xf32, #tpu.memory_space<vmem>>, %arg6: memref<32x40xf32, #tpu.memory_space<vmem>>, %arg7: memref<32x40xf32, #tpu.memory_space<vmem>>, %arg8: memref<1x40xf32, #tpu.memory_space<vmem>>, %arg9: memref<40x640xf32, #tpu.memory_space<vmem>>, %arg10: memref<8x640xf32, #tpu.memory_space<vmem>>) attributes {dimension_semantics = [], scalar_prefetch = 0 : i64, scratch_operands = 0 : i64, tpu.core_type = #tpu.core_type<tc>} {
    %c0 = arith.constant 0 : index
    %c0_0 = arith.constant 0 : index
    %0 = vector.load %arg0[%c0, %c0_0] : memref<8x16xf32, #tpu.memory_space<vmem>>, vector<8x16xf32>
    %c0_1 = arith.constant 0 : index
    %c0_2 = arith.constant 0 : index
    %1 = vector.load %arg2[%c0_1, %c0_2] : memref<16x32xf32, #tpu.memory_space<vmem>>, vector<16x32xf32>
    %cst = arith.constant dense<0.000000e+00> : vector<8x32xf32>
    %2 = tpu.matmul %0, %1, %cst {dimension_numbers = #tpu.dot_dimension_numbers<[1], [0], [0], [1], [0, 0, 1, 1], [], []>} : vector<8x16xf32>, vector<16x32xf32>, vector<8x32xf32> -> vector<8x32xf32>
    %c0_3 = arith.constant 0 : index
    %c0_4 = arith.constant 0 : index
    %3 = vector.load %arg3[%c0_3, %c0_4] : memref<1x32xf32, #tpu.memory_space<vmem>>, vector<1x32xf32>
    %4 = vector.broadcast %3 : vector<1x32xf32> to vector<8x32xf32>
    %5 = arith.addf %2, %4 : vector<8x32xf32>
    %cst_5 = arith.constant dense<0.000000e+00> : vector<32xf32>
    %6 = vector.multi_reduction <add>, %5, %cst_5 [0] : vector<8x32xf32> to vector<32xf32>
    %7 = vector.shape_cast %6 : vector<32xf32> to vector<1x32xf32>
    %cst_6 = arith.constant 8.000000e+00 : f32
    %8 = vector.broadcast %cst_6 : f32 to vector<1x32xf32>
    %9 = arith.divf %7, %8 : vector<1x32xf32>
    %10 = arith.mulf %5, %5 : vector<8x32xf32>
    %cst_7 = arith.constant dense<0.000000e+00> : vector<32xf32>
    %11 = vector.multi_reduction <add>, %10, %cst_7 [0] : vector<8x32xf32> to vector<32xf32>
    %12 = vector.shape_cast %11 : vector<32xf32> to vector<1x32xf32>
    %cst_8 = arith.constant 8.000000e+00 : f32
    %13 = vector.broadcast %cst_8 : f32 to vector<1x32xf32>
    %14 = arith.divf %12, %13 : vector<1x32xf32>
    %15 = arith.mulf %9, %9 : vector<1x32xf32>
    %16 = arith.subf %14, %15 : vector<1x32xf32>
    %17 = vector.broadcast %9 : vector<1x32xf32> to vector<8x32xf32>
    %18 = arith.subf %5, %17 : vector<8x32xf32>
    %cst_9 = arith.constant 9.99999974E-6 : f32
    %19 = vector.broadcast %cst_9 : f32 to vector<1x32xf32>
    %20 = arith.addf %16, %19 : vector<1x32xf32>
    %21 = math.rsqrt %20 : vector<1x32xf32>
    %22 = vector.broadcast %21 : vector<1x32xf32> to vector<8x32xf32>
    %23 = arith.mulf %18, %22 : vector<8x32xf32>
    %c0_10 = arith.constant 0 : index
    %c0_11 = arith.constant 0 : index
    %24 = vector.load %arg4[%c0_10, %c0_11] : memref<1x32xf32, #tpu.memory_space<vmem>>, vector<1x32xf32>
    %25 = vector.broadcast %24 : vector<1x32xf32> to vector<8x32xf32>
    %26 = arith.mulf %23, %25 : vector<8x32xf32>
    %c0_12 = arith.constant 0 : index
    %c0_13 = arith.constant 0 : index
    %27 = vector.load %arg5[%c0_12, %c0_13] : memref<1x32xf32, #tpu.memory_space<vmem>>, vector<1x32xf32>
    %28 = vector.broadcast %27 : vector<1x32xf32> to vector<8x32xf32>
    %29 = arith.addf %26, %28 : vector<8x32xf32>
    %cst_14 = arith.constant 0.000000e+00 : f32
    %30 = vector.broadcast %cst_14 : f32 to vector<8x32xf32>
    %31 = arith.maximumf %29, %30 : vector<8x32xf32>
    %c0_15 = arith.constant 0 : index
    %c0_16 = arith.constant 0 : index
    %32 = vector.load %arg1[%c0_15, %c0_16] : memref<8x32xf32, #tpu.memory_space<vmem>>, vector<8x32xf32>
    %c0_17 = arith.constant 0 : index
    %c0_18 = arith.constant 0 : index
    %33 = vector.load %arg6[%c0_17, %c0_18] : memref<32x40xf32, #tpu.memory_space<vmem>>, vector<32x40xf32>
    %cst_19 = arith.constant dense<0.000000e+00> : vector<8x40xf32>
    %34 = tpu.matmul %32, %33, %cst_19 {dimension_numbers = #tpu.dot_dimension_numbers<[1], [0], [0], [1], [0, 0, 1, 1], [], []>} : vector<8x32xf32>, vector<32x40xf32>, vector<8x40xf32> -> vector<8x40xf32>
    %c0_20 = arith.constant 0 : index
    %c0_21 = arith.constant 0 : index
    %35 = vector.load %arg7[%c0_20, %c0_21] : memref<32x40xf32, #tpu.memory_space<vmem>>, vector<32x40xf32>
    %cst_22 = arith.constant dense<0.000000e+00> : vector<8x40xf32>
    %36 = tpu.matmul %31, %35, %cst_22 {dimension_numbers = #tpu.dot_dimension_numbers<[1], [0], [0], [1], [0, 0, 1, 1], [], []>} : vector<8x32xf32>, vector<32x40xf32>, vector<8x40xf32> -> vector<8x40xf32>
    %37 = arith.addf %34, %36 : vector<8x40xf32>
    %c0_23 = arith.constant 0 : index
    %c0_24 = arith.constant 0 : index
    %38 = vector.load %arg8[%c0_23, %c0_24] : memref<1x40xf32, #tpu.memory_space<vmem>>, vector<1x40xf32>
    %39 = vector.broadcast %38 : vector<1x40xf32> to vector<8x40xf32>
    %40 = arith.addf %37, %39 : vector<8x40xf32>
    %41 = arith.negf %40 : vector<8x40xf32>
    %42 = math.exp %41 : vector<8x40xf32>
    %cst_25 = arith.constant 1.000000e+00 : f32
    %43 = vector.broadcast %cst_25 : f32 to vector<8x40xf32>
    %44 = arith.addf %43, %42 : vector<8x40xf32>
    %45 = arith.divf %43, %44 : vector<8x40xf32>
    %c0_26 = arith.constant 0 : index
    %c0_27 = arith.constant 0 : index
    %46 = vector.load %arg9[%c0_26, %c0_27] : memref<40x640xf32, #tpu.memory_space<vmem>>, vector<40x640xf32>
    %cst_28 = arith.constant dense<0.000000e+00> : vector<8x640xf32>
    %47 = tpu.matmul %45, %46, %cst_28 {dimension_numbers = #tpu.dot_dimension_numbers<[1], [0], [0], [1], [0, 0, 1, 1], [], []>} : vector<8x40xf32>, vector<40x640xf32>, vector<8x640xf32> -> vector<8x640xf32>
    %c0_29 = arith.constant 0 : index
    %c0_30 = arith.constant 0 : index
    %48 = vector.load %arg10[%c0_29, %c0_30] : memref<8x640xf32, #tpu.memory_space<vmem>>, vector<8x640xf32>
    tpu.vector_store %arg10[%c0_29, %c0_30], %47 {strides = array<i32>} : memref<8x640xf32, #tpu.memory_space<vmem>>, vector<8x640xf32>,
    return
  }
}

</mosaic_0001>

<bundles_post_ra>
// kernel: tpu_custom_call.1
= control target key start
LH: loop header
LB: loop body
LE: loop exit
PB: predicated region body
PF: predicated region fallthrough
CT: control target
= control target key end

     0   :  { %15 = vsyncpa [#allocation3], 0  ;;  %s1056_s0 = inlined_call_operand.hbm [shape: f32[8,16], index: 0, kind: input, shape index: {}]   ;;  %s1057_s1 = inlined_call_operand.hbm [shape: f32[8,32], index: 1, kind: input, shape index: {}]   ;;  %s1058_s2 = inlined_call_operand.hbm [shape: f32[16,32], index: 2, kind: input, shape index: {}]   ;;  %s1059_s3 = inlined_call_operand.vmem [shape: f32[1,32], index: 3, kind: input, shape index: {}]   ;;  %s1060_s4 = inlined_call_operand.vmem [shape: f32[1,32], index: 4, kind: input, shape index: {}]   ;;  %s1061_s5 = inlined_call_operand.vmem [shape: f32[1,32], index: 5, kind: input, shape index: {}]   ;;  %s1062_s6 = inlined_call_operand.hbm [shape: f32[32,40], index: 6, kind: input, shape index: {}]   ;;  %s1063_s7 = inlined_call_operand.hbm [shape: f32[32,40], index: 7, kind: input, shape index: {}]   ;;  %s1064_s8 = inlined_call_operand.vmem [shape: f32[1,40], index: 8, kind: input, shape index: {}]   ;;  %s1065_s9 = inlined_call_operand.hbm [shape: f32[40,640], index: 9, kind: input, shape index: {}]   ;;  %s1066_s10 = inlined_call_operand.hbm [shape: f32[8,640], index: 10, kind: output, shape index: {}]  }
   0x1   :  { %16 = vsyncpa [#allocation6], 0 }
   0x2   :  { %17 = vsyncpa [#allocation9], 0 }
   0x3   :  { %18 = vsyncpa [#allocation12], 0 }
   0x4   :  { %19 = vsyncpa [#allocation4], 0  ;;  %s914_s13 = smov [#allocation5]  }
   0x5   :  { %s36_s14 = sshll.u32 %s914_s13, 4  ;;  %s37_s14 = int_to_ptr.vmem [resolvable:$true] %s36_s14 }
   0x6   :  { %s772_s15 = scalar_lea.vmem %s37_s14, 128  ;;  %p777_p1 = scmp.lt.s32.totalorder %s37_s14, %s37_s14 }
   0x7   :  { %p773_p0 = scmp.ne.s32.totalorder %s37_s14, %s772_s15  ;;  %p778_p2 = scmp.lt.s32.totalorder %s772_s15, %s772_s15 }
   0x9   :  { %p779_p3 = por %p778_p2, %p777_p1 }
   0xb   :  { %p780_p4 = pnand %p779_p3, %p773_p0 }
   0xd   :  { %783 = shalt.err (!%p780_p4)
}
   0xe   :  { %39 = dma.hbm_to_vmem [thread:$0]  %s1057_s1, 128, %s37_s14, [#allocation6]  }
   0xf   :  { %s915_s18 = smov [#allocation8]   ;;  %s916_s20 = smov [#allocation2]  }
  0x10   :  { %s63_s19 = sshll.u32 %s915_s18, 4  ;;  %s26_s21 = sshll.u32 %s916_s20, 4  ;;  %s64_s19 = int_to_ptr.vmem [resolvable:$true] %s63_s19  ;;  %s27_s21 = int_to_ptr.vmem [resolvable:$true] %s26_s21 }
  0x11   :  { %s792_s22 = scalar_lea.vmem %s64_s19, 512  ;;  %p797_p6 = scmp.lt.s32.totalorder %s64_s19, %s64_s19 }
  0x12   :  { %p793_p5 = scmp.ne.s32.totalorder %s64_s19, %s792_s22  ;;  %p798_p7 = scmp.lt.s32.totalorder %s792_s22, %s792_s22 }
  0x14   :  { %p799_p8 = por %p798_p7, %p797_p6 }
  0x16   :  { %p800_p9 = pnand %p799_p8, %p793_p5 }
  0x18   :  { %803 = shalt.err (!%p800_p9)
}
  0x19   :  { %s917_s23 = smov 128   ;;  %s918_s24 = smov 8  }
  0x1a   :  { %69 = dma.hbm_to_vmem [thread:$0]  %s1062_s6, 512, %s64_s19, [#allocation9], %s917_s23, %s917_s23, %s918_s24  }
  0x1b   :  { %s812_s1 = scalar_lea.vmem %s27_s21, 128  ;;  %p817_p11 = scmp.lt.s32.totalorder %s27_s21, %s27_s21 }
  0x1c   :  { %p813_p10 = scmp.ne.s32.totalorder %s27_s21, %s812_s1  ;;  %p818_p12 = scmp.lt.s32.totalorder %s812_s1, %s812_s1 }
  0x1e   :  { %p819_p13 = por %p818_p12, %p817_p11 }
  0x20   :  { %p820_p0 = pnand %p819_p13, %p813_p10 }
  0x22   :  { %823 = shalt.err (!%p820_p0)
}
  0x23   :  { %29 = dma.hbm_to_vmem [thread:$0]  %s1056_s0, 128, %s27_s21, [#allocation3]  }
  0x24   :  { %s919_s29 = smov [#allocation7]   ;;  %s920_s11 = smov [#allocation10]  }
  0x25   :  { %s45_s30 = sshll.u32 %s919_s29, 4  ;;  %s75_s12 = sshll.u32 %s920_s11, 4  ;;  %s46_s30 = int_to_ptr.vmem [resolvable:$true] %s45_s30  ;;  %s76_s12 = int_to_ptr.vmem [resolvable:$true] %s75_s12 }
  0x26   :  { %s832_s13 = scalar_lea.vmem %s46_s30, 256  ;;  %p837_p2 = scmp.lt.s32.totalorder %s46_s30, %s46_s30 }
  0x27   :  { %p833_p1 = scmp.ne.s32.totalorder %s46_s30, %s832_s13  ;;  %p838_p3 = scmp.lt.s32.totalorder %s832_s13, %s832_s13 }
  0x29   :  { %p839_p4 = por %p838_p3, %p837_p2 }
  0x2b   :  { %p840_p5 = pnand %p839_p4, %p833_p1 }
  0x2d   :  { %843 = shalt.err (!%p840_p5)
}
  0x2e   :  { %51 = dma.hbm_to_vmem [thread:$0]  %s1058_s2, 256, %s46_s30, [#allocation6], %s917_s23, %s917_s23, %s918_s24  }
  0x2f   :  { %s852_s0 = scalar_lea.vmem %s76_s12, 512  ;;  %p857_p7 = scmp.lt.s32.totalorder %s76_s12, %s76_s12 }
  0x30   :  { %p853_p6 = scmp.ne.s32.totalorder %s76_s12, %s852_s0  ;;  %p858_p8 = scmp.lt.s32.totalorder %s852_s0, %s852_s0 }
  0x32   :  { %p859_p9 = por %p858_p8, %p857_p7 }
  0x34   :  { %p860_p10 = pnand %p859_p9, %p853_p6 }
  0x36   :  { %863 = shalt.err (!%p860_p10)
}
  0x37   :  { %81 = dma.hbm_to_vmem [thread:$0]  %s1063_s7, 512, %s76_s12, [#allocation9], %s917_s23, %s917_s23, %s918_s24  }
  0x38   :  { %s921_s17 = smov [#allocation11]  }
  0x39   :  { %s89_s18 = sshll.u32 %s921_s17, 4  ;;  %s90_s18 = int_to_ptr.vmem [resolvable:$true] %s89_s18 }
  0x3a   :  { %s872_s19 = scalar_lea.vmem %s90_s18, 3200  ;;  %p877_p12 = scmp.lt.s32.totalorder %s90_s18, %s90_s18 }
  0x3b   :  { %p873_p11 = scmp.ne.s32.totalorder %s90_s18, %s872_s19  ;;  %p878_p13 = scmp.lt.s32.totalorder %s872_s19, %s872_s19 }
  0x3d   :  { %p879_p0 = por %p878_p13, %p877_p12 }
  0x3f   :  { %p880_p1 = pnand %p879_p0, %p873_p11 }
  0x41   :  { %883 = shalt.err (!%p880_p1)
}
  0x42   :  { %s922_s2 = smov 640   ;;  %s923_s20 = smov 40  }
  0x43   :  { %95 = dma.hbm_to_vmem [thread:$0]  %s1065_s9, 3200, %s90_s18, [#allocation12], %s922_s2, %s922_s2, %s923_s20  }
  0x44   :  { %904 = dma.done.wait [#allocation3], 128  }
  0x45   :  { %905 = vsyncadd [#allocation3], 4294967168 }
  0x46   :  { %906 = dma.done.wait [#allocation6], 384  }
  0x47   :  { %907 = vsyncadd [#allocation6], 4294966912 }
  0x48   :  { %908 = dma.done.wait [#allocation9], 1024  }
  0x49   :  { %909 = vsyncadd [#allocation9], 4294966272 }
  0x4a   :  { %910 = dma.done.wait [#allocation12], 3200  }
  0x4b   :  { %911 = vsyncadd [#allocation12], 4294964096  ;;  %v924_v0 = vmov 0.0   ;;  %vm925_vm0 = vmmov 0   ;;  %v116_v1 = vld [vmem:[#allocation7 + $0x8] sm:$0xff]  ;;  %v115_v2 = vld [vmem:[#allocation7] sm:$0xff] }
  0x4c   :  { %703 = vmatprep.subr.mxu0 %v924_v0  ;;  %707 = vmatprep.mubr.msk.f32.mxu0 %vm925_vm0, %v924_v0  ;;  %v114_v3 = vld [vmem:[#allocation2] sm:$0xff]  ;;  %vm124_vm1 = vcmask 130048   ;;  %v244_v4 = vld [vmem:[#allocation8 + $0x18] sm:$0xff]  ;;  %v243_v6 = vld [vmem:[#allocation8 + $0x10] sm:$0xff]  ;;  %vm198_vm2 = vcmask 261120   ;;  %vm434_vm3 = vcmask 326656  }
  0x4d   :  { %710 = vmatprep.subr.mxu1 %v924_v0  ;;  %718 = vmatprep.mubr.msk.f32.mxu1 %vm925_vm0, %v924_v0  ;;  %v248_v5 = vld [vmem:[#allocation10 + $0x18] sm:$0xff]  ;;  %v247_v7 = vld [vmem:[#allocation10 + $0x10] sm:$0xff]  ;;  %v242_v8 = vld [vmem:[#allocation8 + $0x8] sm:$0xff] }
  0x4e   :  { %704 = vmatpush3.msra.mxu0 %v116_v1  ;;  %711 = vmatpush3.msra.mxu1 %v248_v5  ;;  %v246_v9 = vld [vmem:[#allocation10 + $0x8] sm:$0xff]  ;;  %v241_v10 = vld [vmem:[#allocation8] sm:$0xff]  ;;  %v432_v49 = vld [vmem:[#allocation11 + $0xb8] sm:$0xff] }
  0x4f   :  { %705 = vmatprep.subr.mxu0 %v924_v0  ;;  %712 = vmatprep.subr.mxu1 %v924_v0  ;;  %v240_v11 = vld [vmem:[#allocation5] sm:$0xff]  ;;  %v245_v12 = vld [vmem:[#allocation10] sm:$0xff]  ;;  %v431_v51 = vld [vmem:[#allocation11 + $0xb0] sm:$0xff] }
  0x50   :  { %706 = vmatpush3.msra.mxu0 %v115_v2  ;;  %713 = vmatpush3.msra.mxu1 %v247_v7  ;;  %v673_v13 = vld [vmem:[%s1059_s3] ss:$0 sm:$0xff]  ;;  %v430_v47 = vld [vmem:[#allocation11 + $0xa8] sm:$0xff]  ;;  %v424_v52 = vld [vmem:[#allocation11 + $0x78] sm:$0xff] }
  0x51   :  { %708 = vmatmul.mubr.msk.f32.vlgmr.msra.gmra.mxu0 %vm124_vm1, %v114_v3  ;;  %721 = vmatprep.subr.mxu0 %v924_v0  ;;  %v675_v39 = vld [vmem:[%s1060_s4] ss:$0 sm:$0xff]  ;;  %v427_v53 = vld [vmem:[#allocation11 + $0x90] sm:$0xff]  ;;  %v420_v54 = vld [vmem:[#allocation11 + $0x58] sm:$0xff] }
  0x52   :  { %729 = vmatprep.mubr.msk.f32.mxu0 %vm925_vm0, %v924_v0  ;;  %722 = vmatpush3.msra.mxu0 %v244_v4  ;;  %v676_v41 = vld [vmem:[%s1061_s5] ss:$0 sm:$0xff]  ;;  %v426_v55 = vld [vmem:[#allocation11 + $0x88] sm:$0xff]  ;;  %v419_v56 = vld [vmem:[#allocation11 + $0x50] sm:$0xff] }
  0x53   :  { %723 = vmatprep.subr.mxu0 %v924_v0  ;;  %714 = vmatprep.subr.mxu1 %v924_v0  ;;  %v429_v48 = vld [vmem:[#allocation11 + $0xa0] sm:$0xff]  ;;  %v422_v57 = vld [vmem:[#allocation11 + $0x68] sm:$0xff]  ;;  %v415_v58 = vld [vmem:[#allocation11 + $0x30] sm:$0xff] }
  0x54   :  { %724 = vmatpush3.msra.mxu0 %v243_v6  ;;  %715 = vmatpush3.msra.mxu1 %v246_v9  ;;  %v425_v50 = vld [vmem:[#allocation11 + $0x80] sm:$0xff]  ;;  %v414_v61 = vld [vmem:[#allocation11 + $0x28] sm:$0xff]  ;;  %v416_v62 = vld [vmem:[#allocation11 + $0x38] sm:$0xff] }
  0x55   :  { %725 = vmatprep.subr.mxu0 %v924_v0  ;;  %716 = vmatprep.subr.mxu1 %v924_v0  ;;  %v421_v59 = vld [vmem:[#allocation11 + $0x60] sm:$0xff]  ;;  %v410_v63 = vld [vmem:[#allocation11 + $0x8] sm:$0xff]  ;;  %v412_v1 = vld [vmem:[#allocation11 + $0x18] sm:$0xff] }
  0x56   :  { %726 = vmatpush3.msra.mxu0 %v242_v8  ;;  %717 = vmatpush3.msra.mxu1 %v245_v12  ;;  %v417_v60 = vld [vmem:[#allocation11 + $0x40] sm:$0xff]  ;;  %v411_v3 = vld [vmem:[#allocation11 + $0x10] sm:$0xff] }
  0x57   :  { %727 = vmatprep.subr.mxu0 %v924_v0  ;;  %460 = vmatprep.subr.mxu1 %v430_v47  ;;  %v409_v2 = vld [vmem:[#allocation11] sm:$0xff] }
  0x58   :  { %728 = vmatpush3.msra.mxu0 %v241_v10  ;;  %v679_v5 = vld [vmem:[%s1064_s8] ss:$0 sm:$0xff]  ;;  %s926_s8 = smov [#allocation13]  }
  0x59   :  { %730 = vmatmul.mubr.msk.f32.vlgmr.msra.gmra.mxu0 %vm198_vm2, %v240_v11  ;;  %531 = vmatprep.subr.mxu0 %v432_v49  ;;  %v433_v12 = vld [vmem:[#allocation11 + $0xc0] sm:$0xff]  ;;  %s661_s26 = sshll.u32 %s926_s8, 4  ;;  %s662_s26 = int_to_ptr.vmem [resolvable:$true] %s661_s26 }
  0x5a   :  { %573 = vmatprep.mubr.f32.mxu0 %v924_v0  ;;  %532 = vmatpush1.msra.mxu0 %v431_v51  ;;  %s884_s1 = scalar_lea.vmem %s662_s26, 640  ;;  %p889_p3 = scmp.lt.s32.totalorder %s662_s26, %s662_s26 }
  0x5b   :  { %533 = vmatprep.subr.mxu0 %v427_v53  ;;  %p885_p2 = scmp.ne.s32.totalorder %s662_s26, %s884_s1  ;;  %p890_p4 = scmp.lt.s32.totalorder %s884_s1, %s884_s1 }
  0x5c   :  { %534 = vmatpush1.msra.mxu0 %v426_v55 }
  0x5d   :  { %535 = vmatprep.subr.mxu0 %v422_v57  ;;  %p891_p5 = por %p890_p4, %p889_p3 }
  0x5e   :  { %536 = vmatpush1.msra.mxu0 %v421_v59 }
  0x5f   :  { %537 = vmatprep.subr.mxu0 %v417_v60  ;;  %p892_p6 = pnand %p891_p5, %p885_p2 }
  0x60   :  { %538 = vmatpush1.msra.mxu0 %v416_v62 }
  0x61   :  { %539 = vmatprep.subr.mxu0 %v412_v1 }
  0x62   :  { %540 = vmatpush1.msra.mxu0 %v411_v3 }
 0x111   :  { %v194_v14 = vpop.f32.mrf.mxu0 }
 0x112   :  { %v195_v15 = vadd.f32 %v673_v13, %v194_v14  ;;  %v428_v14 = vld [vmem:[#allocation11 + $0x98] sm:$0xff] }
 0x113   :  { %v709_v16 = vpop.f32.mrf.mxu0 }
 0x114   :  { %v199_v17 = vsel %vm198_vm2, %v195_v15, 0.0  ;;  %v208_v18 = vmul.f32 %v195_v15, %v195_v15  ;;  %v418_v16 = vld [vmem:[#allocation11 + $0x48] sm:$0xff] }
 0x115   :  { %v200_v19 = vrot.slane %v199_v17, 4 }
 0x116   :  { %v209_v20 = vsel %vm198_vm2, %v208_v18, 0.0 }
 0x117   :  { %v201_v21 = vadd.f32 %v200_v19, %v199_v17  ;;  %v210_v22 = vrot.slane %v209_v20, 4  ;;  %v413_v17 = vld [vmem:[#allocation11 + $0x20] sm:$0xff] }
 0x119   :  { %v202_v23 = vrot.slane %v201_v21, 2  ;;  %v211_v24 = vadd.f32 %v210_v22, %v209_v20  ;;  %v391_v45 = vpop.f32.mrf.mxu0 }
 0x11b   :  { %v203_v25 = vadd.f32 %v202_v23, %v201_v21  ;;  %v212_v26 = vrot.slane %v211_v24, 2  ;;  %v731_v46 = vpop.f32.mrf.mxu0 }
 0x11d   :  { %v204_v27 = vrot.slane %v203_v25, 1  ;;  %v213_v28 = vadd.f32 %v212_v26, %v211_v24 }
 0x11f   :  { %v205_v29 = vadd.f32 %v204_v27, %v203_v25  ;;  %v214_v30 = vrot.slane %v213_v28, 1 }
 0x121   :  { %v207_v31 = vmul.f32 0.125, %v205_v29  ;;  %v215_v32 = vadd.f32 %v214_v30, %v213_v28 }
 0x123   :  { %v216_v33 = vmul.f32 0.125, %v215_v32  ;;  %v217_v34 = vmul.f32 %v207_v31, %v207_v31  ;;  %v219_v37 = vsub.f32 %v195_v15, %v207_v31  ;;  %v423_v15 = vld [vmem:[#allocation11 + $0x70] sm:$0xff] }
 0x125   :  { %v218_v35 = vsub.f32 %v216_v33, %v217_v34 }
 0x127   :  { %v220_v36 = vadd.f32 1e-05, %v218_v35 }
 0x129   :  { %758 = vrsqrt.f32 %v220_v36 }
 0x136   :  { %v759_v38 = vpop.eup %758 }
 0x137   :  { %v222_v40 = vmul.f32 %v759_v38, %v219_v37 }
 0x139   :  { %v230_v42 = vmul.f32 %v675_v39, %v222_v40 }
 0x13b   :  { %v238_v43 = vadd.f32 %v676_v41, %v230_v42 }
 0x13d   :  { %v239_v44 = vmax.f32 %v238_v43, 0.0 }
 0x13f   :  { %719 = vmatmul.mubr.msk.f32.vlgmr.msra.gmra.mxu1 %vm198_vm2, %v239_v44 }
 0x140   :  { %502 = vmatprep.mubr.f32.mxu1 %v924_v0  ;;  %461 = vmatpush1.msra.mxu1 %v429_v48 }
 0x141   :  { %462 = vmatprep.subr.mxu1 %v425_v50 }
 0x142   :  { %463 = vmatpush1.msra.mxu1 %v424_v52 }
 0x143   :  { %464 = vmatprep.subr.mxu1 %v420_v54 }
 0x144   :  { %465 = vmatpush1.msra.mxu1 %v419_v56 }
 0x145   :  { %466 = vmatprep.subr.mxu1 %v415_v58 }
 0x146   :  { %467 = vmatpush1.msra.mxu1 %v414_v61 }
 0x147   :  { %468 = vmatprep.subr.mxu1 %v410_v63 }
 0x148   :  { %469 = vmatpush1.msra.mxu1 %v409_v2 }
 0x149   :  { %732 = vmatprep.subr.mxu1 %v924_v0 }
 0x1ff   :  { %v318_v4 = vpop.f32.mrf.mxu1 }
 0x200   :  { %v392_v6 = vadd.f32 %v391_v45, %v318_v4 }
 0x201   :  { %v720_v7 = vpop.f32.mrf.mxu1 }
 0x202   :  { %v402_v8 = vadd.f32 %v679_v5, %v392_v6 }
 0x204   :  { %v680_v9 = vmul.f32 -1.442695, %v402_v8 }
 0x206   :  { %760 = vpow2.f32 %v680_v9 }
 0x213   :  { %v761_v10 = vpop.eup %760 }
 0x214   :  { %v406_v11 = vadd.f32 1.0, %v761_v10 }
 0x216   :  { %762 = vrcp.f32 %v406_v11 }
 0x223   :  { %v763_v13 = vpop.eup %762 }
 0x224   :  { %681 = vmatmul.mubr.msk.f32.vlgmr.msra.gmra.mxu1 %vm434_vm3, %v763_v13  ;;  %682 = vmatmul.mubr.msk.f32.vlgmr.msra.gmra.mxu0 %vm434_vm3, %v763_v13 }
 0x225   :  { %733 = vmatpush3.msra.mxu1 %v433_v12  ;;  %742 = vmatprep.mubr.msk.f32.mxu1 %vm925_vm0, %v924_v0 }
 0x226   :  { %734 = vmatprep.subr.mxu1 %v924_v0 }
 0x227   :  { %735 = vmatpush3.msra.mxu1 %v428_v14 }
 0x228   :  { %736 = vmatprep.subr.mxu1 %v924_v0 }
 0x229   :  { %737 = vmatpush3.msra.mxu1 %v423_v15 }
 0x22a   :  { %738 = vmatprep.subr.mxu1 %v924_v0 }
 0x22b   :  { %739 = vmatpush3.msra.mxu1 %v418_v16 }
 0x22c   :  { %740 = vmatprep.subr.mxu1 %v924_v0 }
 0x22d   :  { %741 = vmatpush3.msra.mxu1 %v413_v17 }
 0x22e   :  { %743 = vmatmul.mubr.msk.f32.vlgmr.msra.gmra.mxu1 %vm434_vm3, %v763_v13 }
 0x2e4   :  { %v504_v18 = vpop.f32.mrf.mxu1  ;;  %v575_v19 = vpop.f32.mrf.mxu0 }
 0x2e5   :  { %650 = vst [vmem:[#allocation13] sm:$0xff] %v504_v18  ;;  %652 = vst [vmem:[#allocation13 + $0x10] sm:$0xff] %v575_v19 }
 0x2e6   :  { %v506_v20 = vpop.f32.mrf.mxu1  ;;  %v577_v21 = vpop.f32.mrf.mxu0 }
 0x2e7   :  { %651 = vst [vmem:[#allocation13 + $0x8] sm:$0xff] %v506_v20  ;;  %653 = vst [vmem:[#allocation13 + $0x18] sm:$0xff] %v577_v21 }
 0x2ee   :  { %v646_v22 = vpop.f32.mrf.mxu1 }
 0x2ef   :  { %654 = vst [vmem:[#allocation13 + $0x20] sm:$0xff] %v646_v22 }
 0x2f0   :  { %v744_v23 = vpop.f32.mrf.mxu1 }
 0x2f1   :  { %895 = shalt.err (!%p892_p6)
}
 0x2f2   :  { %664 = dma.vmem_to_hbm [thread:$0]  %s662_s26, 640, %s1066_s10, [#allocation4]  }
 0x2f3   :  { %912 = dma.done.wait [#allocation4], 640  }
 0x2f4   :  { %913 = vsyncadd [#allocation4], 4294966656 }
 0x2f5   :  { %668 = vsyncpa [#allocation3], 1 }
 0x2f6   :  { %669 = vsyncpa [#allocation6], 1 }
 0x2f7   :  { %670 = vsyncpa [#allocation9], 1 }
 0x2f8   :  { %671 = vsyncpa [#allocation12], 1 }
 0x2f9   :  { %672 = vsyncpa [#allocation4], 1 }

</bundles_post_ra>
